<compile_context>
chip_gen: v6e
topology: v6e:2x2x1
jax: 0.10.0
libtpu: 0.0.40
codegen_flags: <defaults>
</compile_context>

<pallas_src>
import jax
import jax.numpy as jnp
from jax.experimental import pallas as pl
from jax.experimental.pallas import tpu as pltpu


def _round_up(x, m):
    return (x + m - 1) // m * m


# ---------------------------------------------------------------------------
# Kernels
# ---------------------------------------------------------------------------
def fused_gcn_kernel(a_ref, x_ref, w1_ref, b1_ref, w2_ref, b2_ref,
                     wfc_ref, bfc_ref, o_ref):
    """Both GraphConv layers + FC for one whole (padded) graph.

    a_ref:  (n, n)        bf16  normalized adjacency (self-loops included)
    x_ref:  (n, f_pad)    bf16  node features
    w*_ref: bf16 weights, b*_ref: f32 biases (lane-padded)
    o_ref:  (n, cls_pad)  bf16  per-node logits
    """
    a = a_ref[...]                                  # loaded once, used twice
    # layer 1: aggregate-then-project, f32 accumulation on the MXU
    agg1 = jnp.dot(a, x_ref[...], preferred_element_type=jnp.float32)
    h1 = jnp.dot(agg1.astype(jnp.bfloat16), w1_ref[...],
                 preferred_element_type=jnp.float32)
    h1 = jnp.maximum(h1 + b1_ref[...], 0.0).astype(jnp.bfloat16)
    # layer 2
    agg2 = jnp.dot(a, h1, preferred_element_type=jnp.float32)
    h2 = jnp.dot(agg2.astype(jnp.bfloat16), w2_ref[...],
                 preferred_element_type=jnp.float32)
    h2 = jnp.maximum(h2 + b2_ref[...], 0.0).astype(jnp.bfloat16)
    # final linear classifier
    out = jnp.dot(h2, wfc_ref[...], preferred_element_type=jnp.float32) + bfc_ref[...]
    o_ref[...] = out.astype(o_ref.dtype)


def gcn_layer_kernel(a_ref, h_ref, w_ref, b_ref, o_ref):
    """One GraphConv layer + ReLU for a row tile of one graph (fallback path)."""
    agg = jnp.dot(a_ref[...], h_ref[...], preferred_element_type=jnp.float32)
    h = jnp.dot(agg.astype(jnp.bfloat16), w_ref[...],
                preferred_element_type=jnp.float32)
    o_ref[...] = jnp.maximum(h + b_ref[...], 0.0).astype(o_ref.dtype)


def gcn_layer_fc_kernel(a_ref, h_ref, w2_ref, b2_ref, wfc_ref, bfc_ref, o_ref):
    """Second GraphConv + ReLU fused with the Linear classifier (fallback path)."""
    agg = jnp.dot(a_ref[...], h_ref[...], preferred_element_type=jnp.float32)
    h2 = jnp.dot(agg.astype(jnp.bfloat16), w2_ref[...],
                 preferred_element_type=jnp.float32)
    h2 = jnp.maximum(h2 + b2_ref[...], 0.0).astype(jnp.bfloat16)
    out = jnp.dot(h2, wfc_ref[...], preferred_element_type=jnp.float32) + bfc_ref[...]
    o_ref[...] = out.astype(o_ref.dtype)


# ---------------------------------------------------------------------------
# Wrapper
# ---------------------------------------------------------------------------
def _choose_row_tile(n_pad, f_pad, hid_pad, cls_pad, w_bytes,
                     budget_bytes=40 * 1024 * 1024):
    """Largest multiple-of-128 row tile dividing n_pad whose full working set
    (double-buffered A row block, full-graph H block, output tile, weights,
    f32 intermediates) fits a budget safe for v7x's 64 MiB physical VMEM."""
    h_feat = max(f_pad, hid_pad)
    for tm in (2048, 1024, 512, 256, 128):
        if tm > n_pad or n_pad % tm:
            continue
        need = (2 * tm * n_pad * 2                      # A row block (bf16)
                + 2 * n_pad * h_feat * 2                # full-graph H block
                + 2 * tm * max(hid_pad, cls_pad) * 2    # output tile
                + 2 * w_bytes                           # weights / biases
                + tm * (h_feat + hid_pad + cls_pad) * 8)  # f32 temporaries
        if need <= budget_bytes:
            return tm
    return 128


def graph_classifier_forward(a_hat, x, w1, b1, w2, b2, wfc, bfc):
    """Batched GraphClassifier forward.

    a_hat: (B, N, N) float32 normalized adjacency (self-loops already added)
    x:     (B, N, in_feats) float32 node features
    w1: (in_feats, hidden), w2: (hidden, hidden), wfc: (hidden, classes)
    returns (B, N, classes) float32 per-node logits.
    """
    B, N, in_feats = x.shape
    hidden = w1.shape[1]
    classes = wfc.shape[1]

    b1 = b1.reshape(1, -1)
    b2 = b2.reshape(1, -1)
    bfc = bfc.reshape(1, -1)

    # ---- lane/sublane-dense zero padding (numerically exact) ----------------
    n_pad = _round_up(N, 128)
    f_pad = _round_up(in_feats, 128)
    hid_pad = _round_up(hidden, 128)
    cls_pad = _round_up(classes, 128)

    a_p = jnp.zeros((B, n_pad, n_pad), jnp.float32).at[:, :N, :N].set(a_hat)
    x_p = jnp.zeros((B, n_pad, f_pad), jnp.float32).at[:, :N, :in_feats].set(x)
    a_p = a_p.astype(jnp.bfloat16)   # A dominates HBM bytes -> bf16 for the MXU
    x_p = x_p.astype(jnp.bfloat16)

    w1_p = (jnp.zeros((f_pad, hid_pad), jnp.float32)
            .at[:in_feats, :hidden].set(w1).astype(jnp.bfloat16))
    w2_p = (jnp.zeros((hid_pad, hid_pad), jnp.float32)
            .at[:hidden, :hidden].set(w2).astype(jnp.bfloat16))
    wfc_p = (jnp.zeros((hid_pad, cls_pad), jnp.float32)
             .at[:hidden, :classes].set(wfc).astype(jnp.bfloat16))
    b1_p = jnp.zeros((1, hid_pad), jnp.float32).at[:, :hidden].set(b1)
    b2_p = jnp.zeros((1, hid_pad), jnp.float32).at[:, :hidden].set(b2)
    bfc_p = jnp.zeros((1, cls_pad), jnp.float32).at[:, :classes].set(bfc)

    w_bytes = (2 * (w1_p.size + w2_p.size + wfc_p.size)
               + 4 * (b1_p.size + b2_p.size + bfc_p.size))

    # ---- fused single-call path: whole padded graph resident in VMEM --------
    fused_vmem = (
        2 * n_pad * n_pad * 2            # double-buffered A block (bf16)
        + 2 * n_pad * f_pad * 2          # X block
        + 2 * n_pad * cls_pad * 2        # output block
        + 2 * w_bytes                    # parameter blocks
        + n_pad * (6 * f_pad + 12 * hid_pad + 4 * cls_pad))  # temporaries
    FUSED_BUDGET = 40 * 1024 * 1024      # conservative under v7x's 64 MiB VMEM

    if fused_vmem <= FUSED_BUDGET and B >= 2:
        flops = B * 2 * n_pad * (n_pad * f_pad + f_pad * hid_pad
                                 + n_pad * hid_pad + hid_pad * hid_pad
                                 + hid_pad * cls_pad)
        bytes_acc = int(a_p.size * 2 + x_p.size * 2 + w_bytes
                        + B * n_pad * cls_pad * 2)
        vmem_limit = int(min(48 * 2**20, max(32 * 2**20, 2 * fused_vmem)))

        def graph_blk(feat):
            return pl.BlockSpec((None, n_pad, feat), lambda b: (b, 0, 0))

        def whole(shape):
            return pl.BlockSpec(shape, lambda b: (0, 0))

        out = pl.pallas_call(
            fused_gcn_kernel,
            out_shape=jax.ShapeDtypeStruct((B, n_pad, cls_pad), jnp.bfloat16),
            grid=(B,),
            in_specs=[graph_blk(n_pad), graph_blk(f_pad),
                      whole((f_pad, hid_pad)), whole((1, hid_pad)),
                      whole((hid_pad, hid_pad)), whole((1, hid_pad)),
                      whole((hid_pad, cls_pad)), whole((1, cls_pad))],
            out_specs=graph_blk(cls_pad),
            compiler_params=pltpu.CompilerParams(
                dimension_semantics=("parallel",),
                vmem_limit_bytes=vmem_limit),
            cost_estimate=pl.CostEstimate(flops=flops, transcendentals=0,
                                          bytes_accessed=bytes_acc),
        )(a_p, x_p, w1_p, b1_p, w2_p, b2_p, wfc_p, bfc_p)

        return out[:, :N, :classes].astype(jnp.float32)

    # ---- fallback: row-tiled two-call path (N too large for VMEM, or B < 2) -
    tm = _choose_row_tile(n_pad, f_pad, hid_pad, cls_pad, w_bytes)
    grid = (B, n_pad // tm)
    params = pltpu.CompilerParams(
        dimension_semantics=("parallel", "parallel"),
        vmem_limit_bytes=48 * 2**20)

    def row_block(feat):
        return pl.BlockSpec((None, tm, feat), lambda b, i: (b, i, 0))

    def full_graph(feat):
        return pl.BlockSpec((None, n_pad, feat), lambda b, i: (b, 0, 0))

    def whole(shape):
        return pl.BlockSpec(shape, lambda b, i: (0, 0))

    flops1 = B * 2 * n_pad * (n_pad * f_pad + f_pad * hid_pad)
    bytes1 = int(a_p.size * 2 + x_p.size * 2 + w1_p.size * 2 + b1_p.size * 4
                 + B * n_pad * hid_pad * 2)
    h1 = pl.pallas_call(
        gcn_layer_kernel,
        out_shape=jax.ShapeDtypeStruct((B, n_pad, hid_pad), jnp.bfloat16),
        grid=grid,
        in_specs=[row_block(n_pad), full_graph(f_pad),
                  whole((f_pad, hid_pad)), whole((1, hid_pad))],
        out_specs=row_block(hid_pad),
        compiler_params=params,
        cost_estimate=pl.CostEstimate(flops=flops1, transcendentals=0,
                                      bytes_accessed=bytes1),
    )(a_p, x_p, w1_p, b1_p)

    flops2 = B * 2 * n_pad * (n_pad * hid_pad + hid_pad * hid_pad
                              + hid_pad * cls_pad)
    bytes2 = int(a_p.size * 2 + h1.size * 2 + w2_p.size * 2 + wfc_p.size * 2
                 + (b2_p.size + bfc_p.size) * 4 + B * n_pad * cls_pad * 2)
    out = pl.pallas_call(
        gcn_layer_fc_kernel,
        out_shape=jax.ShapeDtypeStruct((B, n_pad, cls_pad), jnp.bfloat16),
        grid=grid,
        in_specs=[row_block(n_pad), full_graph(hid_pad),
                  whole((hid_pad, hid_pad)), whole((1, hid_pad)),
                  whole((hid_pad, cls_pad)), whole((1, cls_pad))],
        out_specs=row_block(cls_pad),
        compiler_params=params,
        cost_estimate=pl.CostEstimate(flops=flops2, transcendentals=0,
                                      bytes_accessed=bytes2),
    )(a_p, h1, w2_p, b2_p, wfc_p, bfc_p)

    return out[:, :N, :classes].astype(jnp.float32)


def build_normalized_adjacency(key, n):
    """Random symmetric graph, add self-loops, symmetric 'both' normalization."""
    r = jax.random.uniform(key, (n, n))
    adj = (r + r.T > 1.4).astype(jnp.float32)          # symmetric random edges
    adj = adj * (1.0 - jnp.eye(n, dtype=jnp.float32))  # clear diagonal
    adj = adj + jnp.eye(n, dtype=jnp.float32)          # dgl.add_self_loop
    deg = adj.sum(axis=1)
    d_inv_sqrt = 1.0 / jnp.sqrt(deg)
    return adj * d_inv_sqrt[:, None] * d_inv_sqrt[None, :]


if __name__ == "__main__":
    num_graphs = 2
    num_nodes = 64
    in_feats = 16
    hidden_size = 32
    num_classes = 4

    key = jax.random.PRNGKey(0)
    k_adj, k_feat, k_w1, k_b1, k_w2, k_b2, k_wfc, k_bfc = jax.random.split(key, 8)

    adj_keys = jax.random.split(k_adj, num_graphs)
    a_hat = jnp.stack([build_normalized_adjacency(k, num_nodes) for k in adj_keys])
    features = jax.random.normal(k_feat, (num_graphs, num_nodes, in_feats),
                                 dtype=jnp.float32)

    def glorot(k, shape):
        fan_in, fan_out = shape
        scale = jnp.sqrt(6.0 / (fan_in + fan_out))
        return jax.random.uniform(k, shape, minval=-scale, maxval=scale,
                                  dtype=jnp.float32)

    w1 = glorot(k_w1, (in_feats, hidden_size))
    b1 = 0.01 * jax.random.normal(k_b1, (1, hidden_size), dtype=jnp.float32)
    w2 = glorot(k_w2, (hidden_size, hidden_size))
    b2 = 0.01 * jax.random.normal(k_b2, (1, hidden_size), dtype=jnp.float32)
    wfc = glorot(k_wfc, (hidden_size, num_classes))
    bfc = 0.01 * jax.random.normal(k_bfc, (1, num_classes), dtype=jnp.float32)

    out = graph_classifier_forward(a_hat, features, w1, b1, w2, b2, wfc, bfc)
    out = jax.block_until_ready(out)

    # Pure-JAX reference replicating the kernel's bf16 quantization points
    # (inputs, weights, aggregation results, inter-layer activations, output);
    # all matmul accumulation in f32, bias+ReLU in f32 — same as the kernel.
    hp = jax.lax.Precision.HIGHEST

    def q(v):
        return v.astype(jnp.bfloat16).astype(jnp.float32)

    a_q = q(a_hat)
    x_q = q(features)
    agg1 = q(jnp.matmul(a_q, x_q, precision=hp))
    h1 = q(jnp.maximum(jnp.matmul(agg1, q(w1), precision=hp) + b1, 0.0))
    agg2 = q(jnp.matmul(a_q, h1, precision=hp))
    h2 = q(jnp.maximum(jnp.matmul(agg2, q(w2), precision=hp) + b2, 0.0))
    ref = q(jnp.matmul(h2, q(wfc), precision=hp) + bfc)

    assert out.shape == (num_graphs, num_nodes, num_classes)
    assert jnp.allclose(out, ref, atol=2e-2, rtol=2e-2), \
        float(jnp.max(jnp.abs(out - ref)))

    print("KERNEL_OK")
</pallas_src>

<mosaic_0001>
module attributes {stable_mosaic.version = 11 : i64} {
  func.func @fused_gcn_kernel(%arg0: i32, %arg1: memref<1x128x128xbf16, #tpu.memory_space<vmem>>, %arg2: memref<1x128x128xbf16, #tpu.memory_space<vmem>>, %arg3: memref<128x128xbf16, #tpu.memory_space<vmem>>, %arg4: memref<1x128xf32, #tpu.memory_space<vmem>>, %arg5: memref<128x128xbf16, #tpu.memory_space<vmem>>, %arg6: memref<1x128xf32, #tpu.memory_space<vmem>>, %arg7: memref<128x128xbf16, #tpu.memory_space<vmem>>, %arg8: memref<1x128xf32, #tpu.memory_space<vmem>>, %arg9: memref<1x128x128xbf16, #tpu.memory_space<vmem>>) attributes {dimension_semantics = [#tpu.dimension_semantics<parallel>], iteration_bounds = array<i64: 2>, scalar_prefetch = 0 : i64, scratch_operands = 0 : i64, tpu.core_type = #tpu.core_type<tc>, window_params = [{transform_indices = @transform_0, window_bounds = array<i64: 1, 128, 128>}, {transform_indices = @transform_1, window_bounds = array<i64: 1, 128, 128>}, {pipeline_mode = #tpu.pipeline_mode<synchronous>, transform_indices = @transform_2, window_bounds = array<i64: 128, 128>}, {pipeline_mode = #tpu.pipeline_mode<synchronous>, transform_indices = @transform_3, window_bounds = array<i64: 1, 128>}, {pipeline_mode = #tpu.pipeline_mode<synchronous>, transform_indices = @transform_4, window_bounds = array<i64: 128, 128>}, {pipeline_mode = #tpu.pipeline_mode<synchronous>, transform_indices = @transform_5, window_bounds = array<i64: 1, 128>}, {pipeline_mode = #tpu.pipeline_mode<synchronous>, transform_indices = @transform_6, window_bounds = array<i64: 128, 128>}, {pipeline_mode = #tpu.pipeline_mode<synchronous>, transform_indices = @transform_7, window_bounds = array<i64: 1, 128>}, {transform_indices = @transform_8, window_bounds = array<i64: 1, 128, 128>}]} {
    %c0 = arith.constant 0 : index
    %c0_0 = arith.constant 0 : index
    %c0_1 = arith.constant 0 : index
    %0 = vector.load %arg1[%c0, %c0_0, %c0_1] : memref<1x128x128xbf16, #tpu.memory_space<vmem>>, vector<1x128x128xbf16>
    %1 = vector.shape_cast %0 : vector<1x128x128xbf16> to vector<128x128xbf16>
    %c0_2 = arith.constant 0 : index
    %c0_3 = arith.constant 0 : index
    %c0_4 = arith.constant 0 : index
    %2 = vector.load %arg2[%c0_2, %c0_3, %c0_4] : memref<1x128x128xbf16, #tpu.memory_space<vmem>>, vector<1x128x128xbf16>
    %3 = vector.shape_cast %2 : vector<1x128x128xbf16> to vector<128x128xbf16>
    %cst = arith.constant dense<0.000000e+00> : vector<128x128xf32>
    %4 = tpu.matmul %1, %3, %cst {dimension_numbers = #tpu.dot_dimension_numbers<[1], [0], [0], [1], [0, 0, 1, 1], [], []>} : vector<128x128xbf16>, vector<128x128xbf16>, vector<128x128xf32> -> vector<128x128xf32>
    %5 = arith.truncf %4 : vector<128x128xf32> to vector<128x128xbf16>
    %c0_5 = arith.constant 0 : index
    %c0_6 = arith.constant 0 : index
    %6 = vector.load %arg3[%c0_5, %c0_6] : memref<128x128xbf16, #tpu.memory_space<vmem>>, vector<128x128xbf16>
    %cst_7 = arith.constant dense<0.000000e+00> : vector<128x128xf32>
    %7 = tpu.matmul %5, %6, %cst_7 {dimension_numbers = #tpu.dot_dimension_numbers<[1], [0], [0], [1], [0, 0, 1, 1], [], []>} : vector<128x128xbf16>, vector<128x128xbf16>, vector<128x128xf32> -> vector<128x128xf32>
    %c0_8 = arith.constant 0 : index
    %c0_9 = arith.constant 0 : index
    %8 = vector.load %arg4[%c0_8, %c0_9] : memref<1x128xf32, #tpu.memory_space<vmem>>, vector<1x128xf32>
    %9 = vector.broadcast %8 : vector<1x128xf32> to vector<128x128xf32>
    %10 = arith.addf %7, %9 : vector<128x128xf32>
    %cst_10 = arith.constant 0.000000e+00 : f32
    %11 = vector.broadcast %cst_10 : f32 to vector<128x128xf32>
    %12 = arith.maximumf %10, %11 : vector<128x128xf32>
    %13 = arith.truncf %12 : vector<128x128xf32> to vector<128x128xbf16>
    %cst_11 = arith.constant dense<0.000000e+00> : vector<128x128xf32>
    %14 = tpu.matmul %1, %13, %cst_11 {dimension_numbers = #tpu.dot_dimension_numbers<[1], [0], [0], [1], [0, 0, 1, 1], [], []>} : vector<128x128xbf16>, vector<128x128xbf16>, vector<128x128xf32> -> vector<128x128xf32>
    %15 = arith.truncf %14 : vector<128x128xf32> to vector<128x128xbf16>
    %c0_12 = arith.constant 0 : index
    %c0_13 = arith.constant 0 : index
    %16 = vector.load %arg5[%c0_12, %c0_13] : memref<128x128xbf16, #tpu.memory_space<vmem>>, vector<128x128xbf16>
    %cst_14 = arith.constant dense<0.000000e+00> : vector<128x128xf32>
    %17 = tpu.matmul %15, %16, %cst_14 {dimension_numbers = #tpu.dot_dimension_numbers<[1], [0], [0], [1], [0, 0, 1, 1], [], []>} : vector<128x128xbf16>, vector<128x128xbf16>, vector<128x128xf32> -> vector<128x128xf32>
    %c0_15 = arith.constant 0 : index
    %c0_16 = arith.constant 0 : index
    %18 = vector.load %arg6[%c0_15, %c0_16] : memref<1x128xf32, #tpu.memory_space<vmem>>, vector<1x128xf32>
    %19 = vector.broadcast %18 : vector<1x128xf32> to vector<128x128xf32>
    %20 = arith.addf %17, %19 : vector<128x128xf32>
    %cst_17 = arith.constant 0.000000e+00 : f32
    %21 = vector.broadcast %cst_17 : f32 to vector<128x128xf32>
    %22 = arith.maximumf %20, %21 : vector<128x128xf32>
    %23 = arith.truncf %22 : vector<128x128xf32> to vector<128x128xbf16>
    %c0_18 = arith.constant 0 : index
    %c0_19 = arith.constant 0 : index
    %24 = vector.load %arg7[%c0_18, %c0_19] : memref<128x128xbf16, #tpu.memory_space<vmem>>, vector<128x128xbf16>
    %cst_20 = arith.constant dense<0.000000e+00> : vector<128x128xf32>
    %25 = tpu.matmul %23, %24, %cst_20 {dimension_numbers = #tpu.dot_dimension_numbers<[1], [0], [0], [1], [0, 0, 1, 1], [], []>} : vector<128x128xbf16>, vector<128x128xbf16>, vector<128x128xf32> -> vector<128x128xf32>
    %c0_21 = arith.constant 0 : index
    %c0_22 = arith.constant 0 : index
    %26 = vector.load %arg8[%c0_21, %c0_22] : memref<1x128xf32, #tpu.memory_space<vmem>>, vector<1x128xf32>
    %27 = vector.broadcast %26 : vector<1x128xf32> to vector<128x128xf32>
    %28 = arith.addf %25, %27 : vector<128x128xf32>
    %29 = arith.truncf %28 : vector<128x128xf32> to vector<128x128xbf16>
    %c0_23 = arith.constant 0 : index
    %c0_24 = arith.constant 0 : index
    %c0_25 = arith.constant 0 : index
    %30 = vector.load %arg9[%c0_23, %c0_24, %c0_25] : memref<1x128x128xbf16, #tpu.memory_space<vmem>>, vector<1x128x128xbf16>
    %31 = vector.shape_cast %30 : vector<1x128x128xbf16> to vector<128x128xbf16>
    %32 = vector.shape_cast %29 : vector<128x128xbf16> to vector<1x128x128xbf16>
    tpu.vector_store %arg9[%c0_23, %c0_24, %c0_25], %32 {strides = array<i32>} : memref<1x128x128xbf16, #tpu.memory_space<vmem>>, vector<1x128x128xbf16>,
    return
  }
  func.func @transform_0(%arg0: i32) -> (i32, i32, i32) {
    %c0_i32 = arith.constant 0 : i32
    %c0_i32_0 = arith.constant 0 : i32
    %c0_i32_1 = arith.constant 0 : i32
    return %arg0, %c0_i32, %c0_i32_0 : i32, i32, i32
  }
  func.func @transform_1(%arg0: i32) -> (i32, i32, i32) {
    %c0_i32 = arith.constant 0 : i32
    %c0_i32_0 = arith.constant 0 : i32
    %c0_i32_1 = arith.constant 0 : i32
    return %arg0, %c0_i32, %c0_i32_0 : i32, i32, i32
  }
  func.func @transform_2(%arg0: i32) -> (i32, i32) {
    %c0_i32 = arith.constant 0 : i32
    %c0_i32_0 = arith.constant 0 : i32
    %c0_i32_1 = arith.constant 0 : i32
    return %c0_i32, %c0_i32_0 : i32, i32
  }
  func.func @transform_3(%arg0: i32) -> (i32, i32) {
    %c0_i32 = arith.constant 0 : i32
    %c0_i32_0 = arith.constant 0 : i32
    %c0_i32_1 = arith.constant 0 : i32
    return %c0_i32, %c0_i32_0 : i32, i32
  }
  func.func @transform_4(%arg0: i32) -> (i32, i32) {
    %c0_i32 = arith.constant 0 : i32
    %c0_i32_0 = arith.constant 0 : i32
    %c0_i32_1 = arith.constant 0 : i32
    return %c0_i32, %c0_i32_0 : i32, i32
  }
  func.func @transform_5(%arg0: i32) -> (i32, i32) {
    %c0_i32 = arith.constant 0 : i32
    %c0_i32_0 = arith.constant 0 : i32
    %c0_i32_1 = arith.constant 0 : i32
    return %c0_i32, %c0_i32_0 : i32, i32
  }
  func.func @transform_6(%arg0: i32) -> (i32, i32) {
    %c0_i32 = arith.constant 0 : i32
    %c0_i32_0 = arith.constant 0 : i32
    %c0_i32_1 = arith.constant 0 : i32
    return %c0_i32, %c0_i32_0 : i32, i32
  }
  func.func @transform_7(%arg0: i32) -> (i32, i32) {
    %c0_i32 = arith.constant 0 : i32
    %c0_i32_0 = arith.constant 0 : i32
    %c0_i32_1 = arith.constant 0 : i32
    return %c0_i32, %c0_i32_0 : i32, i32
  }
  func.func @transform_8(%arg0: i32) -> (i32, i32, i32) {
    %c0_i32 = arith.constant 0 : i32
    %c0_i32_0 = arith.constant 0 : i32
    %c0_i32_1 = arith.constant 0 : i32
    return %arg0, %c0_i32, %c0_i32_0 : i32, i32, i32
  }
}

</mosaic_0001>

<bundles_post_ra>
// kernel: tpu_custom_call.1
= control target key start
LH: loop header
LB: loop body
LE: loop exit
PB: predicated region body
PF: predicated region fallthrough
CT: control target
= control target key end

     0   :  { %s2647_s0 = inlined_call_operand.hbm [shape: bf16[2,128,128], index: 0, kind: input, shape index: {}]   ;;  %s2648_s1 = inlined_call_operand.hbm [shape: bf16[2,128,128], index: 1, kind: input, shape index: {}]   ;;  %s2649_s2 = inlined_call_operand.hbm [shape: bf16[128,128], index: 2, kind: input, shape index: {}]   ;;  %s2650_s3 = inlined_call_operand.vmem [shape: f32[1,128], index: 3, kind: input, shape index: {}]   ;;  %s2651_s4 = inlined_call_operand.hbm [shape: bf16[128,128], index: 4, kind: input, shape index: {}]   ;;  %s2652_s5 = inlined_call_operand.vmem [shape: f32[1,128], index: 5, kind: input, shape index: {}]   ;;  %s2653_s6 = inlined_call_operand.hbm [shape: bf16[128,128], index: 6, kind: input, shape index: {}]   ;;  %s2654_s7 = inlined_call_operand.vmem [shape: f32[1,128], index: 7, kind: input, shape index: {}]   ;;  %s2655_s8 = inlined_call_operand.hbm [shape: bf16[2,128,128], index: 8, kind: output, shape index: {}]  }
   0x1   :  { %2666 = sst [smem:[#allocation20_spill]] %s2647_s0 }
   0x2   :  { %2667 = sst [smem:[#allocation21_spill]] %s2649_s2 }
   0x3   :  { %2668 = sst [smem:[#allocation22_spill]] %s2651_s4 }
   0x4   :  { %2669 = sst [smem:[#allocation23_spill]] %s2653_s6 }
   0x5   :  { %13 = vsyncpa [#allocation3], 0 }
   0x6   :  { %15 = vsyncpa [#allocation3 + $0x1], 0 }
   0x7   :  { %16 = vsyncpa [#allocation6], 0 }
   0x8   :  { %18 = vsyncpa [#allocation6 + $0x1], 0 }
   0x9   :  { %19 = vsyncpa [#allocation9], 0 }
   0xa   :  { %20 = vsyncpa [#allocation4], 0 }
   0xb   :  { %22 = vsyncpa [#allocation4 + $0x1], 0  ;;  %s2314_s27 = smov 0   ;;  %s2316_s28 = smov 0  }
   0xc   :  { %s2318_s29 = smov 0   ;;  %s2320_s30 = smov 0  }
   0xd LB: > { %2670 = sst [smem:[#allocation17_spill]] %s2253_s29  ;;  %s2335_s9 = sadd.s32 4294967295, %s2257_s30   ;;  %s2257_s30 = sphi %s2320_s30, %s2693_s30   ;;  %s2253_s29 = sphi %s2318_s29, %s2695_s29   ;;  %s2249_s28 = sphi %s2316_s28, %s2697_s28   ;;  %s2245_s27 = sphi %s2314_s27, %s2696_s27  }
   0xe   : > { %s1516_s10 = sadd.s32 4294967294, %s2257_s30   ;;  %p48_p0 = scmp.ne.s32.totalorder %s2249_s28, %s2245_s27 }
   0xf   : > { %p2656_p1 = scmp.eq.s32.totalorder %s2335_s9, 0  ;;  %p224_p2 = scmp.eq.s32.totalorder %s2335_s9, 1 }
  0x10   : > { %p230_p3 = scmp.eq.s32.totalorder %s1516_s10, 1  ;;  %p1517_p5 = scmp.ge.s32.totalorder %s2257_s30, 1 }
  0x11   : > { %p2344_p4 = por %p2656_p1, %p48_p0  ;;  %p237_p7 = scmp.lt.s32.totalorder %s2257_s30, 3 }
  0x12   : > { %p2349_p6 = por %p230_p3, %p48_p0  ;;  %s2259_s14 = smov [#allocation7]  }
  0x13   : > { %s2671_s11 = scalar_select %p2344_p4, 1, 0 }
  0x14   : > { %s2672_s12 = scalar_select %p2349_p6, 1, 0 }
  0x15   : > { %p2354_p8 = pnand %p1517_p5, %p237_p7  ;;  %s249_s15 = sshll.u32 %s2259_s14, 4  ;;  %s250_s15 = int_to_ptr.vmem [resolvable:$true] %s249_s15 }
  0x16   : > { %s2260_s17 = smov [#allocation8]   ;;  %s2261_s19 = smov [#allocation10]  }
  0x17   : > { %p1939_p9 = pneg %p2354_p8  ;;  %s265_s18 = sshll.u32 %s2260_s17, 4  ;;  %s266_s18 = int_to_ptr.vmem [resolvable:$true] %s265_s18 }
  0x18   : > { %s281_s20 = sshll.u32 %s2261_s19, 4  ;;  %s2058_s21 = scalar_lea.vmem %s250_s15, 1024  ;;  %s282_s20 = int_to_ptr.vmem [resolvable:$true] %s281_s20 }
  0x19   : > { %p2363_p11 = pnand %p1939_p9, %p2656_p1  ;;  %p2059_p13 = scmp.ne.s32.totalorder %s250_s15, %s2058_s21 }
  0x1a   : > { %p2066_p5 = scmp.lt.s32.totalorder %s250_s15, %s250_s15  ;;  %p2067_p7 = scmp.lt.s32.totalorder %s2058_s21, %s2058_s21 }
  0x1b   : > { %p2049_p12 = pneg %p2363_p11 }
  0x1c   : > { %p2068_p9 = por %p2067_p7, %p2066_p5 }
  0x1d   : > { %p2061_p0 = pnand %p2059_p13, %p2049_p12 }
  0x1f   : > { %p2062_p3 = pneg %p2061_p0 }
  0x21   : > { %p2069_p10 = pnand %p2068_p9, %p2062_p3 }
  0x23   : > { %2072 = shalt.err (!%p2069_p10)
}
  0x24   : > { %s2657_s22 = smov 64   ;;  %s2659_s23 = smov 4  }
  0x25   : > { %s2675_s2 = sld [smem:[#allocation21_spill]]  ;;  %s2084_s26 = scalar_lea.vmem %s266_s18, 1024 }
  0x26   : > { %p2085_p13 = scmp.ne.s32.totalorder %s266_s18, %s2084_s26  ;;  %p2092_p3 = scmp.lt.s32.totalorder %s266_s18, %s266_s18 }
  0x27   : > { %p2093_p10 = scmp.lt.s32.totalorder %s2084_s26, %s2084_s26 }
  0x28   : > { %p2087_p0 = pnand %p2085_p13, %p2049_p12 }
  0x29   : > { %p2094_p7 = por %p2093_p10, %p2092_p3 }
  0x2a   : > { %p2088_p5 = pneg %p2087_p0 }
  0x2b   : > { %1942 = dma.hbm_to_vmem [thread:$0]  (!%p2363_p11), %s2675_s2, 1024, %s250_s15, [#allocation6], %s2657_s22, %s2657_s22, %s2659_s23  }
  0x2c   : > { %p2095_p9 = pnand %p2094_p7, %p2088_p5 }
  0x2e   : > { %2098 = shalt.err (!%p2095_p9)
}
  0x2f   : > { %s2676_s4 = sld [smem:[#allocation22_spill]]  ;;  %s2110_s15 = scalar_lea.vmem %s282_s20, 1024 }
  0x30   : > { %p2111_p1 = scmp.ne.s32.totalorder %s282_s20, %s2110_s15  ;;  %p2118_p3 = scmp.lt.s32.totalorder %s282_s20, %s282_s20 }
  0x31   : > { %p2119_p5 = scmp.lt.s32.totalorder %s2110_s15, %s2110_s15 }
  0x32   : > { %p2113_p13 = pnand %p2111_p1, %p2049_p12 }
  0x33   : > { %p2120_p10 = por %p2119_p5, %p2118_p3 }
  0x34   : > { %p2114_p0 = pneg %p2113_p13 }
  0x35   : > { %1945 = dma.hbm_to_vmem [thread:$0]  (!%p2363_p11), %s2676_s4, 1024, %s266_s18, [#allocation9], %s2657_s22, %s2657_s22, %s2659_s23  }
  0x36   : > { %p2121_p7 = pnand %p2120_p10, %p2114_p0 }
  0x38   : > { %2124 = shalt.err (!%p2121_p7)
}
  0x39   : > { %s2677_s6 = sld [smem:[#allocation23_spill]]  ;;  %s2403_s18 = sadd.s32 1, %s2257_s30  }
  0x3a   : > { %2678 = sst [smem:[#allocation18_spill]] %s2403_s18  ;;  %s32_s16 = ssub.s32 %s2257_s30, %s2403_s18 }
  0x3b   : > { %s35_s21 = sadd.s32 1, %s2253_s29  ;;  %p33_p1 = scmp.eq.s32.totalorder %s32_s16, 0 }
  0x3c   : > { %p42_p12 = scmp.ne.s32.totalorder %s2253_s29, %s2249_s28  ;;  %p43_p9 = scmp.eq.s32.totalorder %s2257_s30, 0 }
  0x3d   : > { %p1963_p13 = scmp.lt.s32.totalorder %s2257_s30, 2  ;;  %s298_s26 = sand.u32 1, %s2253_s29  }
  0x3e   : > { %s2413_s24 = scalar_select %p33_p1, %s2253_s29, %s35_s21  }
  0x3f   : > { %1948 = dma.hbm_to_vmem [thread:$0]  (!%p2363_p11), %s2677_s6, 1024, %s282_s20, [#allocation9], %s2657_s22, %s2657_s22, %s2659_s23  }
  0x40   : > { %2679 = sst [smem:[#allocation19_spill]] %s2413_s24  ;;  %p44_p0 = por %p43_p9, %p42_p12 }
  0x41   : > { %p2417_p3 = por %p224_p2, %p42_p12  ;;  %s1599_s10 = sshll.u32 %s2257_s30, 10 }
  0x42   : > { %s2423_s20 = sshll.u32 %s298_s26, 6  ;;  %s2681_s0 = sld [smem:[#allocation20_spill]] }
  0x43   : > { %s2680_s25 = scalar_select %p2417_p3, 1, 0 }
  0x44   : > { %s302_s19 = scalar_lea.vmem [#allocation2], %s2423_s20  ;;  %p2431_p11 = pnand %p1963_p13, %p44_p0 }
  0x45   : > { %s309_s16 = sshll.u32 %s302_s19, 4  ;;  %s2440_s14 = scalar_lea.hbm %s2648_s1, %s1599_s10  ;;  %s2435_s16 = int_to_ptr.vmem [resolvable:$true] %s309_s16 }
  0x46   : > { %s2442_s15 = scalar_lea.sflag [#allocation3], %s298_s26  ;;  %p2127_p5 = pneg %p2431_p11 }
  0x48   : > { %s2428_s17 = scalar_lea.hbm %s2681_s0, %s1599_s10  ;;  %s2130_s6 = scalar_lea.hbm %s2681_s0, 2048 }
  0x49   : > { %s2125_s2 = scalar_lea.hbm %s2428_s17, 1024  ;;  %p2131_p1 = scmp.lt.s32.totalorder %s2428_s17, %s2681_s0 }
  0x4a   : > { %p2126_p2 = scmp.ne.s32.totalorder %s2428_s17, %s2125_s2  ;;  %p2132_p12 = scmp.lt.s32.totalorder %s2130_s6, %s2125_s2 }
  0x4c   : > { %p2128_p10 = pnand %p2127_p5, %p2126_p2  ;;  %p2133_p9 = por %p2132_p12, %p2131_p1 }
  0x4e   : > { %p2129_p7 = pneg %p2128_p10 }
  0x50   : > { %p2134_p13 = pnand %p2133_p9, %p2129_p7 }
  0x52   : > { %2137 = shalt.err (!%p2134_p13)
}
  0x53   : > { %s2138_s22 = scalar_lea.vmem %s2435_s16, 1024  ;;  %s2264_s4 = smov [#allocation2]  }
  0x54   : > { %p2139_p0 = scmp.ne.s32.totalorder %s2435_s16, %s2138_s22  ;;  %s2143_s23 = sshll.u32 %s2264_s4, 4  ;;  %s2144_s23 = int_to_ptr.vmem [resolvable:$false] %s2143_s23 }
  0x55   : > { %s2145_s26 = scalar_lea.vmem %s2144_s23, 2048  ;;  %p2146_p6 = scmp.lt.s32.totalorder %s2435_s16, %s2144_s23 }
  0x56   : > { %p2141_p2 = pnand %p2139_p0, %p2127_p5  ;;  %p2147_p3 = scmp.lt.s32.totalorder %s2145_s26, %s2138_s22 }
  0x58   : > { %p2142_p10 = pneg %p2141_p2  ;;  %p2148_p4 = por %p2147_p3, %p2146_p6 }
  0x5a   : > { %p2149_p1 = pnand %p2148_p4, %p2142_p10 }
  0x5c   : > { %2152 = shalt.err (!%p2149_p1)
}
  0x5d   : > { %s2683_s2 = smov 4   ;;  %s2684_s6 = smov 64  }
  0x5e   : > { %1952 = dma.hbm_to_vmem [thread:$0]  (!%p2431_p11), %s2428_s17, 1024, %s2435_s16, %s2442_s15, %s2684_s6, %s2684_s6, %s2683_s2  }
  0x5f   : > { %s323_s29 = scalar_lea.vmem [#allocation5], %s2423_s20  ;;  %s319_s10 = sand.u32 1, %s2257_s30  }
  0x60   : > { %s330_s24 = sshll.u32 %s323_s29, 4  ;;  %s320_s19 = scalar_lea.sflag [#allocation6], %s319_s10  ;;  %s2474_s24 = int_to_ptr.vmem [resolvable:$true] %s330_s24 }
  0x61   : > { %s2153_s22 = scalar_lea.hbm %s2440_s14, 1024  ;;  %s2158_s26 = scalar_lea.hbm %s2648_s1, 2048 }
  0x62   : > { %p2154_p4 = scmp.ne.s32.totalorder %s2440_s14, %s2153_s22  ;;  %p2159_p7 = scmp.lt.s32.totalorder %s2440_s14, %s2648_s1 }
  0x63   : > { %p2160_p12 = scmp.lt.s32.totalorder %s2158_s26, %s2153_s22 }
  0x64   : > { %p2156_p6 = pnand %p2154_p4, %p2127_p5 }
  0x65   : > { %p2161_p9 = por %p2160_p12, %p2159_p7 }
  0x66   : > { %p2157_p3 = pneg %p2156_p6 }
  0x68   : > { %p2162_p13 = pnand %p2161_p9, %p2157_p3 }
  0x6a   : > { %2165 = shalt.err (!%p2162_p13)
}
  0x6b   : > { %s2166_s20 = scalar_lea.vmem %s2474_s24, 1024  ;;  %s2265_s17 = smov [#allocation5]  }
  0x6c   : > { %p2167_p0 = scmp.ne.s32.totalorder %s2474_s24, %s2166_s20  ;;  %s2171_s16 = sshll.u32 %s2265_s17, 4  ;;  %s2172_s16 = int_to_ptr.vmem [resolvable:$false] %s2171_s16 }
  0x6d   : > { %s2173_s15 = scalar_lea.vmem %s2172_s16, 2048  ;;  %p2174_p1 = scmp.lt.s32.totalorder %s2474_s24, %s2172_s16 }
  0x6e   : > { %p2169_p2 = pnand %p2167_p0, %p2127_p5  ;;  %p2175_p4 = scmp.lt.s32.totalorder %s2173_s15, %s2166_s20 }
  0x70   : > { %p2170_p10 = pneg %p2169_p2  ;;  %p2176_p6 = por %p2175_p4, %p2174_p1 }
  0x72   : > { %p2177_p7 = pnand %p2176_p6, %p2170_p10 }
  0x74   : > { %2180 = shalt.err (!%p2177_p7)
}
  0x75   : > { %1955 = dma.hbm_to_vmem [thread:$0]  (!%p2431_p11), %s2440_s14, 1024, %s2474_s24, %s320_s19, %s2684_s6, %s2684_s6, %s2683_s2  }
  0x76   : > { %342 = sbr.rel (%p2354_p8) target bundleno = 1276 (0x4fc), region = 52  ;;  %s2504_s0 = sand.u32 (!%p2354_p8), 1, %s2249_s28  }
  0x77   : > { %s2507_s18 = sshll.u32 (!%p2354_p8), %s2504_s0, 6  ;;  %s345_s29 = scalar_lea.sflag (!%p2354_p8), [#allocation3], %s2504_s0 }
  0x78   : > { %s2511_s21 = scalar_lea.vmem (!%p2354_p8), [#allocation2], %s2507_s18  ;;  %p2685_p5 = scmp.ne.s32.totalorder (!%p2354_p8), %s2671_s11, 0 }
  0x7b   : > { %2224 = dma.done.wait (%p2685_p5), %s345_s29, 1024  }
  0x7c   : > { %2226 = vsyncadd (%p2685_p5), %s345_s29, 4294966272  ;;  %s353_s13 = sand.u32 1, %s2335_s9   ;;  %s2519_s2 = scalar_lea.vmem [#allocation5], %s2507_s18 }
  0x7d   : > { %s354_s14 = scalar_lea.sflag [#allocation6], %s353_s13 }
  0x7e   : > { %2228 = dma.done.wait (%p2685_p5), %s354_s14, 1024  }
  0x7f   : > { %2230 = vsyncadd (%p2685_p5), %s354_s14, 4294966272  ;;  %p2686_p8 = scmp.eq.s32.totalorder %s2335_s9, 0 }
  0x81   : > { %2232 = dma.done.wait (%p2686_p8), [#allocation6], 1024   ;;  %p2687_p11 = pmov %p2686_p8 }
  0x82   : > { %p2688_p3 = pmov %p2686_p8 }
  0x83   : > { %2234 = vsyncadd (%p2687_p11), [#allocation6], 4294966272 }
  0x84   : > { %2236 = dma.done.wait (%p2688_p3), [#allocation9], 2048   ;;  %p2689_p12 = pmov %p2688_p3 }
  0x85   : > { %v2007_v0 = vld [vmem:[%s2519_s2 + $0x38] sm:$0xff]   ;;  %v2008_v1 = vld [vmem:[%s2519_s2 + $0x30] sm:$0xff]   ;;  %v2009_v2 = vld [vmem:[%s2519_s2 + $0x28] sm:$0xff]   ;;  %s2587_s4 = scalar_lea.vmem [#allocation11], %s2507_s18  ;;  %s1617_s26 = sshll.u32 %s2335_s9, 10 }
  0x86   : > { %2238 = vsyncadd (%p2689_p12), [#allocation9], 4294965248  ;;  %1745 = vmatprep.subr.bf16.mxu0 %v2007_v0  ;;  %v2010_v3 = vld [vmem:[%s2519_s2 + $0x20] sm:$0xff]   ;;  %v2011_v5 = vld [vmem:[%s2519_s2 + $0x18] sm:$0xff]   ;;  %s1392_s23 = sshll.u32 %s2587_s4, 4  ;;  %s2602_s16 = scalar_lea.hbm %s2655_s8, %s1617_s26  ;;  %s2597_s23 = int_to_ptr.vmem [resolvable:$true] %s1392_s23 }
  0x87   : > { %1746 = vmatpush3.bf16.msra.mxu0 %v2007_v0  ;;  %v2015_v4 = vld [vmem:[%s2511_s21] sm:$0xff]   ;;  %v2012_v6 = vld [vmem:[%s2519_s2 + $0x10] sm:$0xff]   ;;  %v2023_v7 = vld [vmem:[#allocation7 + $0x38] sm:$0xff]   ;;  %s1379_s15 = scalar_lea.sflag [#allocation4], %s2504_s0  ;;  %s2181_s18 = scalar_lea.vmem %s2597_s23, 1024 }
  0x88   : > { %1747 = vmatprep.subr.bf16.mxu0 %v2008_v1  ;;  %1761 = vmatprep.mubr.bf16.mxu0 %v2015_v4  ;;  %v2024_v8 = vld [vmem:[#allocation7 + $0x30] sm:$0xff]   ;;  %v2013_v9 = vld [vmem:[%s2519_s2 + $0x8] sm:$0xff]   ;;  %v2014_v11 = vld [vmem:[%s2519_s2] sm:$0xff]   ;;  %p2182_p9 = scmp.ne.s32.totalorder %s2597_s23, %s2181_s18  ;;  %p2690_p13 = scmp.ne.s32.totalorder %s2680_s25, 0 }
  0x89   : > { %1777 = vmatprep.subr.bf16.mxu1 %v2023_v7  ;;  %v2025_v10 = vld [vmem:[#allocation7 + $0x28] sm:$0xff]   ;;  %v2026_v12 = vld [vmem:[#allocation7 + $0x20] sm:$0xff]   ;;  %v2027_v13 = vld [vmem:[#allocation7 + $0x18] sm:$0xff]   ;;  %s2266_s9 = smov [#allocation11]  }
  0x8a   : > { %1778 = vmatpush3.bf16.msra.mxu1 %v2023_v7  ;;  %v2543_v14 = vld [vmem:[%s2511_s21 + $0x8] sm:$0xff]   ;;  %v2546_v15 = vld [vmem:[%s2511_s21 + $0x10] sm:$0xff]   ;;  %v2551_v17 = vld [vmem:[%s2511_s21 + $0x18] sm:$0xff]   ;;  %p2183_p0 = pnand %p2182_p9, %p2690_p13  ;;  %s2185_s29 = sshll.u32 %s2266_s9, 4  ;;  %s2186_s29 = int_to_ptr.vmem [resolvable:$false] %s2185_s29 }
  0x8b   : > { %1748 = vmatpush3.bf16.msra.mxu0 %v2008_v1  ;;  %1779 = vmatprep.subr.bf16.mxu1 %v2024_v8  ;;  %v2028_v16 = vld [vmem:[#allocation7 + $0x10] sm:$0xff]   ;;  %v2554_v18 = vld [vmem:[%s2511_s21 + $0x20] sm:$0xff]   ;;  %v2559_v19 = vld [vmem:[%s2511_s21 + $0x28] sm:$0xff]   ;;  %p2188_p10 = scmp.lt.s32.totalorder %s2597_s23, %s2186_s29 }
  0x8c   : > { %1749 = vmatprep.subr.bf16.mxu0 %v2009_v2  ;;  %v2562_v20 = vld [vmem:[%s2511_s21 + $0x30] sm:$0xff]   ;;  %v2567_v21 = vld [vmem:[%s2511_s21 + $0x38] sm:$0xff]   ;;  %v2029_v22 = vld [vmem:[#allocation7 + $0x8] sm:$0xff]   ;;  %p2184_p2 = pneg %p2183_p0  ;;  %s2187_s21 = scalar_lea.vmem %s2186_s29, 2048 }
  0x8d   : > { %v2030_v23 = vld [vmem:[#allocation7] sm:$0xff]   ;;  %v2031_v48 = vld [vmem:[#allocation8 + $0x38] sm:$0xff]   ;;  %v2032_v49 = vld [vmem:[#allocation8 + $0x30] sm:$0xff]   ;;  %p2189_p1 = scmp.lt.s32.totalorder %s2187_s21, %s2181_s18 }
  0x8e   : > { %1780 = vmatpush3.bf16.msra.mxu1 %v2024_v8  ;;  %v2033_v50 = vld [vmem:[#allocation8 + $0x28] sm:$0xff]   ;;  %v2034_v51 = vld [vmem:[#allocation8 + $0x20] sm:$0xff]   ;;  %v2035_v52 = vld [vmem:[#allocation8 + $0x18] sm:$0xff]  }
  0x8f   : > { %1750 = vmatpush3.bf16.msra.mxu0 %v2009_v2  ;;  %1781 = vmatprep.subr.bf16.mxu1 %v2025_v10  ;;  %v2036_v53 = vld [vmem:[#allocation8 + $0x10] sm:$0xff]   ;;  %p2190_p4 = por %p2189_p1, %p2188_p10 }
  0x90   : > { %1751 = vmatprep.subr.bf16.mxu0 %v2010_v3 }
  0x91   : > { %p2191_p6 = pnand %p2190_p4, %p2184_p2 }
  0x92   : > { %1782 = vmatpush3.bf16.msra.mxu1 %v2025_v10 }
  0x93   : > { %1752 = vmatpush3.bf16.msra.mxu0 %v2010_v3  ;;  %1783 = vmatprep.subr.bf16.mxu1 %v2026_v12  ;;  %v1551_v3 = vld [vmem:[%s2650_s3] ss:$0 sm:$0xff] }
  0x94   : > { %1753 = vmatprep.subr.bf16.mxu0 %v2011_v5 }
  0x96   : > { %1784 = vmatpush3.bf16.msra.mxu1 %v2026_v12 }
  0x97   : > { %1754 = vmatpush3.bf16.msra.mxu0 %v2011_v5  ;;  %1785 = vmatprep.subr.bf16.mxu1 %v2027_v13 }
  0x98   : > { %1755 = vmatprep.subr.bf16.mxu0 %v2012_v6 }
  0x9a   : > { %1786 = vmatpush3.bf16.msra.mxu1 %v2027_v13 }
  0x9b   : > { %1756 = vmatpush3.bf16.msra.mxu0 %v2012_v6  ;;  %1787 = vmatprep.subr.bf16.mxu1 %v2028_v16 }
  0x9c   : > { %1757 = vmatprep.subr.bf16.mxu0 %v2013_v9 }
  0x9e   : > { %1788 = vmatpush3.bf16.msra.mxu1 %v2028_v16 }
  0x9f   : > { %1758 = vmatpush3.bf16.msra.mxu0 %v2013_v9  ;;  %1789 = vmatprep.subr.bf16.mxu1 %v2029_v22 }
  0xa0   : > { %1759 = vmatprep.subr.bf16.mxu0 %v2014_v11 }
  0xa2   : > { %1790 = vmatpush3.bf16.msra.mxu1 %v2029_v22 }
  0xa3   : > { %1760 = vmatpush3.bf16.msra.mxu0 %v2014_v11  ;;  %1791 = vmatprep.subr.bf16.mxu1 %v2030_v23 }
  0xa6   : > { %1762 = vmatmul.mubr.bf16.vlgmr.msra.gmra.mxu0 %v2543_v14  ;;  %1792 = vmatpush3.bf16.msra.mxu1 %v2030_v23 }
  0xa7   : > { %1765 = vmatprep.mubr.bf16.mxu0 %v2546_v15  ;;  %1841 = vmatprep.subr.bf16.mxu1 %v2031_v48 }
  0xae   : > { %1766 = vmatmul.mubr.bf16.gmra.mxu0 %v2551_v17 }
  0xaf   : > { %1769 = vmatprep.mubr.bf16.mxu0 %v2554_v18 }
  0xb6   : > { %1770 = vmatmul.mubr.bf16.gmra.mxu0 %v2559_v19 }
  0xb7   : > { %1773 = vmatprep.mubr.bf16.mxu0 %v2562_v20 }
  0xbe   : > { %1774 = vmatmul.mubr.bf16.gmra.mxu0 %v2567_v21 }
  0xbf   : > { %1825 = vmatprep.mubr.bf16.mxu0 %v2015_v4 }
 0x166   : > { %v1763_v24 = vpop.f32.mrf.mxu0 }
 0x168   : > { %v570_v25 = vpop.f32.mrf.mxu0 }
 0x16a   : > { %v1764_v26 = vpop.f32.mrf.mxu0 }
 0x16b   : > { %v634_v29 = vpack.c.bf16 %v1764_v26, %v1763_v24 }
 0x16c   : > { %v573_v27 = vpop.f32.mrf.mxu0 }
 0x16d   : > { %v633_v28 = vpack.c.bf16 %v573_v27, %v570_v25 }
 0x16e   : > { %v1767_v30 = vpop.f32.mrf.mxu0 }
 0x16f   : > { %1793 = vmatprep.mubr.bf16.mxu1 %v633_v28 }
 0x170   : > { %v586_v31 = vpop.f32.mrf.mxu0  ;;  %1794 = vmatmul.mubr.bf16.vlgmr.msra.gmra.mxu1 %v634_v29 }
 0x171   : > { %1842 = vmatpush3.bf16.msra.mxu1 %v2031_v48 }
 0x172   : > { %v1768_v32 = vpop.f32.mrf.mxu0  ;;  %1843 = vmatprep.subr.bf16.mxu1 %v2032_v49 }
 0x173   : > { %v636_v35 = vpack.c.bf16 %v1768_v32, %v1767_v30 }
 0x174   : > { %v589_v33 = vpop.f32.mrf.mxu0 }
 0x175   : > { %v635_v34 = vpack.c.bf16 %v589_v33, %v586_v31  ;;  %1844 = vmatpush3.bf16.msra.mxu1 %v2032_v49 }
 0x176   : > { %v1771_v36 = vpop.f32.mrf.mxu0  ;;  %1845 = vmatprep.subr.bf16.mxu1 %v2033_v50 }
 0x177   : > { %1797 = vmatprep.mubr.bf16.mxu1 %v635_v34 }
 0x178   : > { %v602_v37 = vpop.f32.mrf.mxu0  ;;  %1798 = vmatmul.mubr.bf16.gmra.mxu1 %v636_v35 }
 0x179   : > { %1846 = vmatpush3.bf16.msra.mxu1 %v2033_v50 }
 0x17a   : > { %v1772_v38 = vpop.f32.mrf.mxu0  ;;  %1847 = vmatprep.subr.bf16.mxu1 %v2034_v51 }
 0x17b   : > { %v638_v41 = vpack.c.bf16 %v1772_v38, %v1771_v36 }
 0x17c   : > { %v605_v39 = vpop.f32.mrf.mxu0 }
 0x17d   : > { %v637_v40 = vpack.c.bf16 %v605_v39, %v602_v37  ;;  %1848 = vmatpush3.bf16.msra.mxu1 %v2034_v51 }
 0x17e   : > { %v1775_v42 = vpop.f32.mrf.mxu0  ;;  %1849 = vmatprep.subr.bf16.mxu1 %v2035_v52 }
 0x17f   : > { %1801 = vmatprep.mubr.bf16.mxu1 %v637_v40 }
 0x180   : > { %v618_v43 = vpop.f32.mrf.mxu0  ;;  %1802 = vmatmul.mubr.bf16.gmra.mxu1 %v638_v41 }
 0x181   : > { %1850 = vmatpush3.bf16.msra.mxu1 %v2035_v52 }
 0x182   : > { %v1776_v44 = vpop.f32.mrf.mxu0  ;;  %1851 = vmatprep.subr.bf16.mxu1 %v2036_v53 }
 0x183   : > { %v640_v47 = vpack.c.bf16 %v1776_v44, %v1775_v42 }
 0x184   : > { %v621_v45 = vpop.f32.mrf.mxu0 }
 0x185   : > { %v639_v46 = vpack.c.bf16 %v621_v45, %v618_v43  ;;  %1852 = vmatpush3.bf16.msra.mxu1 %v2036_v53 }
 0x187   : > { %1805 = vmatprep.mubr.bf16.mxu1 %v639_v46 }
 0x188   : > { %1806 = vmatmul.mubr.bf16.gmra.mxu1 %v640_v47 }
 0x230   : > { %v1795_v54 = vpop.f32.mrf.mxu1 }
 0x231   : > { %v755_v43 = vadd.f32 %v1795_v54, %v1551_v3  ;;  %v2037_v54 = vld [vmem:[#allocation8 + $0x8] sm:$0xff]  }
 0x232   : > { %v746_v55 = vpop.f32.mrf.mxu1  ;;  %1853 = vmatprep.subr.bf16.mxu1 %v2037_v54 }
 0x233   : > { %v811_v48 = vmax.f32 %v755_v43, 0.0  ;;  %v747_v49 = vadd.f32 %v1551_v3, %v746_v55  ;;  %1854 = vmatpush3.bf16.msra.mxu1 %v2037_v54  ;;  %v2038_v55 = vld [vmem:[#allocation8] sm:$0xff]  }
 0x234   : > { %v1796_v56 = vpop.f32.mrf.mxu1  ;;  %1855 = vmatprep.subr.bf16.mxu1 %v2038_v55 }
 0x235   : > { %v758_v40 = vadd.f32 %v1796_v56, %v1551_v3  ;;  %v809_v52 = vmax.f32 %v747_v49, 0.0  ;;  %v2039_v56 = vld [vmem:[#allocation10 + $0x38] sm:$0xff]  }
 0x236   : > { %v749_v57 = vpop.f32.mrf.mxu1 }
 0x237   : > { %v812_v45 = vmax.f32 %v758_v40, 0.0  ;;  %v750_v46 = vadd.f32 %v1551_v3, %v749_v57  ;;  %1856 = vmatpush3.bf16.msra.mxu1 %v2038_v55 }
 0x238   : > { %v1799_v58 = vpop.f32.mrf.mxu1  ;;  %1905 = vmatprep.subr.bf16.mxu1 %v2039_v56 }
 0x239   : > { %v771_v33 = vadd.f32 %v1799_v58, %v1551_v3  ;;  %v826_v50 = vpack.c.bf16 %v812_v45, %v811_v48  ;;  %v810_v51 = vmax.f32 %v750_v46, 0.0 }
 0x23a   : > { %v762_v59 = vpop.f32.mrf.mxu1 }
 0x23b   : > { %v815_v38 = vmax.f32 %v771_v33, 0.0  ;;  %v763_v39 = vadd.f32 %v1551_v3, %v762_v59  ;;  %v825_v53 = vpack.c.bf16 %v810_v51, %v809_v52 }
 0x23c   : > { %v1800_v60 = vpop.f32.mrf.mxu1 }
 0x23d   : > { %v774_v30 = vadd.f32 %v1800_v60, %v1551_v3  ;;  %v813_v44 = vmax.f32 %v763_v39, 0.0 }
 0x23e   : > { %v765_v61 = vpop.f32.mrf.mxu1 }
 0x23f   : > { %v816_v35 = vmax.f32 %v774_v30, 0.0  ;;  %v766_v36 = vadd.f32 %v1551_v3, %v765_v61 }
 0x240   : > { %v1803_v62 = vpop.f32.mrf.mxu1 }
 0x241   : > { %v787_v16 = vadd.f32 %v1803_v62, %v1551_v3  ;;  %v828_v41 = vpack.c.bf16 %v816_v35, %v815_v38  ;;  %v814_v42 = vmax.f32 %v766_v36, 0.0 }
 0x242   : > { %v778_v63 = vpop.f32.mrf.mxu1 }
 0x243   : > { %v819_v28 = vmax.f32 %v787_v16, 0.0  ;;  %v779_v29 = vadd.f32 %v1551_v3, %v778_v63  ;;  %v827_v47 = vpack.c.bf16 %v814_v42, %v813_v44  ;;  %v2044_v16 = vld [vmem:[#allocation10 + $0x10] sm:$0xff]  }
 0x244   : > { %v1804_v0 = vpop.f32.mrf.mxu1 }
 0x245   : > { %v790_v10 = vadd.f32 %v1804_v0, %v1551_v3  ;;  %v817_v34 = vmax.f32 %v779_v29, 0.0 }
 0x246   : > { %v781_v1 = vpop.f32.mrf.mxu1 }
 0x247   : > { %v820_v25 = vmax.f32 %v790_v10, 0.0  ;;  %v782_v26 = vadd.f32 %v1551_v3, %v781_v1 }
 0x248   : > { %v1807_v2 = vpop.f32.mrf.mxu1 }
 0x249   : > { %v803_v5 = vadd.f32 %v1807_v2, %v1551_v3  ;;  %v830_v31 = vpack.c.bf16 %v820_v25, %v819_v28  ;;  %v818_v32 = vmax.f32 %v782_v26, 0.0  ;;  %v1560_v26 = vld [vmem:[%s2652_s5] ss:$0 sm:$0xff] }
 0x24a   : > { %v794_v4 = vpop.f32.mrf.mxu1 }
 0x24b   : > { %v795_v7 = vadd.f32 %v1551_v3, %v794_v4  ;;  %v823_v11 = vmax.f32 %v803_v5, 0.0  ;;  %v829_v37 = vpack.c.bf16 %v818_v32, %v817_v34 }
 0x24c   : > { %v1808_v6 = vpop.f32.mrf.mxu1 }
 0x24d   : > { %v806_v8 = vadd.f32 %v1808_v6, %v1551_v3  ;;  %v821_v22 = vmax.f32 %v795_v7, 0.0 }
 0x24e   : > { %v797_v9 = vpop.f32.mrf.mxu1 }
 0x24f   : > { %v824_v12 = vmax.f32 %v806_v8, 0.0  ;;  %v798_v13 = vadd.f32 %v1551_v3, %v797_v9 }
 0x251   : > { %v832_v23 = vpack.c.bf16 %v824_v12, %v823_v11  ;;  %v822_v24 = vmax.f32 %v798_v13, 0.0 }
 0x253   : > { %v831_v27 = vpack.c.bf16 %v822_v24, %v821_v22  ;;  %1809 = vmatprep.subr.bf16.mxu0 %v832_v23  ;;  %v2045_v22 = vld [vmem:[#allocation10 + $0x8] sm:$0xff]  }
 0x254   : > { %1810 = vmatpush3.bf16.msra.mxu0 %v832_v23  ;;  %v2046_v23 = vld [vmem:[#allocation10] sm:$0xff]  }
 0x255   : > { %1811 = vmatprep.subr.bf16.mxu0 %v831_v27 }
 0x258   : > { %1812 = vmatpush3.bf16.msra.mxu0 %v831_v27 }
 0x259   : > { %1813 = vmatprep.subr.bf16.mxu0 %v830_v31 }
 0x25c   : > { %1814 = vmatpush3.bf16.msra.mxu0 %v830_v31 }
 0x25d   : > { %1815 = vmatprep.subr.bf16.mxu0 %v829_v37 }
 0x260   : > { %1816 = vmatpush3.bf16.msra.mxu0 %v829_v37 }
 0x261   : > { %1817 = vmatprep.subr.bf16.mxu0 %v828_v41 }
 0x264   : > { %1818 = vmatpush3.bf16.msra.mxu0 %v828_v41 }
 0x265   : > { %1819 = vmatprep.subr.bf16.mxu0 %v827_v47 }
 0x268   : > { %1820 = vmatpush3.bf16.msra.mxu0 %v827_v47 }
 0x269   : > { %1821 = vmatprep.subr.bf16.mxu0 %v826_v50 }
 0x26c   : > { %1822 = vmatpush3.bf16.msra.mxu0 %v826_v50 }
 0x26d   : > { %1823 = vmatprep.subr.bf16.mxu0 %v825_v53 }
 0x270   : > { %1824 = vmatpush3.bf16.msra.mxu0 %v825_v53 }
 0x271   : > { %1873 = vmatprep.subr.bf16.mxu0 %v2039_v56 }
 0x273   : > { %1826 = vmatmul.mubr.bf16.vlgmr.msra.gmra.mxu0 %v2543_v14  ;;  %v2040_v14 = vld [vmem:[#allocation10 + $0x30] sm:$0xff]  }
 0x274   : > { %1829 = vmatprep.mubr.bf16.mxu0 %v2546_v15  ;;  %1874 = vmatpush3.bf16.msra.mxu0 %v2039_v56  ;;  %v2041_v15 = vld [vmem:[#allocation10 + $0x28] sm:$0xff]  }
 0x275   : > { %1875 = vmatprep.subr.bf16.mxu0 %v2040_v14 }
 0x278   : > { %1876 = vmatpush3.bf16.msra.mxu0 %v2040_v14 }
 0x279   : > { %1877 = vmatprep.subr.bf16.mxu0 %v2041_v15 }
 0x27b   : > { %1830 = vmatmul.mubr.bf16.gmra.mxu0 %v2551_v17  ;;  %v2042_v17 = vld [vmem:[#allocation10 + $0x20] sm:$0xff]  }
 0x27c   : > { %1833 = vmatprep.mubr.bf16.mxu0 %v2554_v18  ;;  %1878 = vmatpush3.bf16.msra.mxu0 %v2041_v15  ;;  %v2043_v18 = vld [vmem:[#allocation10 + $0x18] sm:$0xff]  }
 0x27d   : > { %1879 = vmatprep.subr.bf16.mxu0 %v2042_v17 }
 0x280   : > { %1880 = vmatpush3.bf16.msra.mxu0 %v2042_v17 }
 0x281   : > { %1881 = vmatprep.subr.bf16.mxu0 %v2043_v18 }
 0x283   : > { %1834 = vmatmul.mubr.bf16.gmra.mxu0 %v2559_v19 }
 0x284   : > { %1837 = vmatprep.mubr.bf16.mxu0 %v2562_v20  ;;  %1882 = vmatpush3.bf16.msra.mxu0 %v2043_v18 }
 0x285   : > { %1883 = vmatprep.subr.bf16.mxu0 %v2044_v16 }
 0x288   : > { %1884 = vmatpush3.bf16.msra.mxu0 %v2044_v16 }
 0x289   : > { %1885 = vmatprep.subr.bf16.mxu0 %v2045_v22 }
 0x28b   : > { %1838 = vmatmul.mubr.bf16.gmra.mxu0 %v2567_v21 }
 0x28c   : > { %1886 = vmatpush3.bf16.msra.mxu0 %v2045_v22 }
 0x28d   : > { %1887 = vmatprep.subr.bf16.mxu0 %v2046_v23 }
 0x290   : > { %1888 = vmatpush3.bf16.msra.mxu0 %v2046_v23 }
 0x333   : > { %v1827_v19 = vpop.f32.mrf.mxu0 }
 0x335   : > { %v867_v20 = vpop.f32.mrf.mxu0 }
 0x337   : > { %v1828_v21 = vpop.f32.mrf.mxu0 }
 0x338   : > { %v931_v59 = vpack.c.bf16 %v1828_v21, %v1827_v19 }
 0x339   : > { %v870_v57 = vpop.f32.mrf.mxu0 }
 0x33a   : > { %v930_v58 = vpack.c.bf16 %v870_v57, %v867_v20 }
 0x33b   : > { %v1831_v60 = vpop.f32.mrf.mxu0 }
 0x33c   : > { %1857 = vmatprep.mubr.bf16.mxu1 %v930_v58 }
 0x33d   : > { %v883_v61 = vpop.f32.mrf.mxu0  ;;  %1858 = vmatmul.mubr.bf16.vlgmr.msra.gmra.mxu1 %v931_v59 }
 0x33e   : > { %1913 = vmatpush3.bf16.msra.mxu1 %v2039_v56 }
 0x33f   : > { %v1832_v62 = vpop.f32.mrf.mxu0  ;;  %1906 = vmatprep.subr.bf16.mxu1 %v2040_v14 }
 0x340   : > { %v933_v1 = vpack.c.bf16 %v1832_v62, %v1831_v60 }
 0x341   : > { %v886_v63 = vpop.f32.mrf.mxu0 }
 0x342   : > { %v932_v0 = vpack.c.bf16 %v886_v63, %v883_v61  ;;  %1914 = vmatpush3.bf16.msra.mxu1 %v2040_v14 }
 0x343   : > { %v1835_v2 = vpop.f32.mrf.mxu0  ;;  %1907 = vmatprep.subr.bf16.mxu1 %v2041_v15 }
 0x344   : > { %1861 = vmatprep.mubr.bf16.mxu1 %v932_v0 }
 0x345   : > { %v899_v3 = vpop.f32.mrf.mxu0  ;;  %1862 = vmatmul.mubr.bf16.gmra.mxu1 %v933_v1 }
 0x346   : > { %1915 = vmatpush3.bf16.msra.mxu1 %v2041_v15 }
 0x347   : > { %v1836_v4 = vpop.f32.mrf.mxu0  ;;  %1908 = vmatprep.subr.bf16.mxu1 %v2042_v17 }
 0x348   : > { %v935_v7 = vpack.c.bf16 %v1836_v4, %v1835_v2 }
 0x349   : > { %v902_v5 = vpop.f32.mrf.mxu0 }
 0x34a   : > { %v934_v6 = vpack.c.bf16 %v902_v5, %v899_v3  ;;  %1916 = vmatpush3.bf16.msra.mxu1 %v2042_v17 }
 0x34b   : > { %v1839_v8 = vpop.f32.mrf.mxu0  ;;  %1909 = vmatprep.subr.bf16.mxu1 %v2043_v18 }
 0x34c   : > { %1865 = vmatprep.mubr.bf16.mxu1 %v934_v6 }
 0x34d   : > { %v915_v9 = vpop.f32.mrf.mxu0  ;;  %1866 = vmatmul.mubr.bf16.gmra.mxu1 %v935_v7 }
 0x34e   : > { %1917 = vmatpush3.bf16.msra.mxu1 %v2043_v18 }
 0x34f   : > { %v1840_v10 = vpop.f32.mrf.mxu0  ;;  %1910 = vmatprep.subr.bf16.mxu1 %v2044_v16 }
 0x350   : > { %v937_v13 = vpack.c.bf16 %v1840_v10, %v1839_v8 }
 0x351   : > { %v918_v11 = vpop.f32.mrf.mxu0 }
 0x352   : > { %v936_v12 = vpack.c.bf16 %v918_v11, %v915_v9  ;;  %1918 = vmatpush3.bf16.msra.mxu1 %v2044_v16  ;;  %v1569_v11 = vld [vmem:[%s2654_s7] ss:$0 sm:$0xff] }
 0x353   : > { %1911 = vmatprep.subr.bf16.mxu1 %v2045_v22 }
 0x354   : > { %1869 = vmatprep.mubr.bf16.mxu1 %v936_v12 }
 0x355   : > { %1870 = vmatmul.mubr.bf16.gmra.mxu1 %v937_v13 }
 0x356   : > { %1919 = vmatpush3.bf16.msra.mxu1 %v2045_v22 }
 0x357   : > { %1912 = vmatprep.subr.bf16.mxu1 %v2046_v23 }
 0x35a   : > { %1920 = vmatpush3.bf16.msra.mxu1 %v2046_v23 }
 0x3fd   : > { %v1859_v24 = vpop.f32.mrf.mxu1 }
 0x3fe   : > { %v1052_v30 = vadd.f32 %v1859_v24, %v1560_v26 }
 0x3ff   : > { %v1043_v25 = vpop.f32.mrf.mxu1 }
 0x400   : > { %v1044_v28 = vadd.f32 %v1560_v26, %v1043_v25  ;;  %v1108_v37 = vmax.f32 %v1052_v30, 0.0 }
 0x401   : > { %v1860_v27 = vpop.f32.mrf.mxu1 }
 0x402   : > { %v1055_v29 = vadd.f32 %v1860_v27, %v1560_v26  ;;  %v1106_v35 = vmax.f32 %v1044_v28, 0.0 }
 0x403   : > { %v1046_v31 = vpop.f32.mrf.mxu1 }
 0x404   : > { %v1047_v32 = vadd.f32 %v1560_v26, %v1046_v31  ;;  %v1109_v33 = vmax.f32 %v1055_v29, 0.0 }
 0x405   : > { %v1863_v34 = vpop.f32.mrf.mxu1 }
 0x406   : > { %v1107_v36 = vmax.f32 %v1047_v32, 0.0  ;;  %v1123_v40 = vpack.c.bf16 %v1109_v33, %v1108_v37  ;;  %v1068_v44 = vadd.f32 %v1863_v34, %v1560_v26 }
 0x407   : > { %v1059_v38 = vpop.f32.mrf.mxu1 }
 0x408   : > { %v1122_v39 = vpack.c.bf16 %v1107_v36, %v1106_v35  ;;  %v1060_v42 = vadd.f32 %v1560_v26, %v1059_v38  ;;  %v1112_v51 = vmax.f32 %v1068_v44, 0.0 }
 0x409   : > { %v1864_v41 = vpop.f32.mrf.mxu1 }
 0x40a   : > { %v1071_v43 = vadd.f32 %v1864_v41, %v1560_v26  ;;  %1889 = vmatprep.mubr.bf16.mxu0 %v1122_v39  ;;  %v1110_v49 = vmax.f32 %v1060_v42, 0.0 }
 0x40b   : > { %v1062_v45 = vpop.f32.mrf.mxu1  ;;  %1890 = vmatmul.mubr.bf16.vlgmr.msra.gmra.mxu0 %v1123_v40 }
 0x40c   : > { %v1063_v46 = vadd.f32 %v1560_v26, %v1062_v45  ;;  %v1113_v47 = vmax.f32 %v1071_v43, 0.0 }
 0x40d   : > { %v1867_v48 = vpop.f32.mrf.mxu1 }
 0x40e   : > { %v1111_v50 = vmax.f32 %v1063_v46, 0.0  ;;  %v1125_v54 = vpack.c.bf16 %v1113_v47, %v1112_v51  ;;  %v1084_v15 = vadd.f32 %v1867_v48, %v1560_v26 }
 0x40f   : > { %v1075_v52 = vpop.f32.mrf.mxu1 }
 0x410   : > { %v1124_v53 = vpack.c.bf16 %v1111_v50, %v1110_v49  ;;  %v1076_v56 = vadd.f32 %v1560_v26, %v1075_v52  ;;  %v1116_v58 = vmax.f32 %v1084_v15, 0.0 }
 0x411   : > { %v1868_v55 = vpop.f32.mrf.mxu1 }
 0x412   : > { %v1087_v14 = vadd.f32 %v1868_v55, %v1560_v26  ;;  %1893 = vmatprep.mubr.bf16.mxu0 %v1124_v53  ;;  %v1114_v21 = vmax.f32 %v1076_v56, 0.0 }
 0x413   : > { %v1078_v17 = vpop.f32.mrf.mxu1  ;;  %1894 = vmatmul.mubr.bf16.gmra.mxu0 %v1125_v54 }
 0x414   : > { %v1079_v18 = vadd.f32 %v1560_v26, %v1078_v17  ;;  %v1117_v19 = vmax.f32 %v1087_v14, 0.0 }
 0x415   : > { %v1871_v20 = vpop.f32.mrf.mxu1 }
 0x416   : > { %v1115_v57 = vmax.f32 %v1079_v18, 0.0  ;;  %v1127_v61 = vpack.c.bf16 %v1117_v19, %v1116_v58  ;;  %v1100_v1 = vadd.f32 %v1871_v20, %v1560_v26 }
 0x417   : > { %v1091_v59 = vpop.f32.mrf.mxu1 }
 0x418   : > { %v1126_v60 = vpack.c.bf16 %v1115_v57, %v1114_v21  ;;  %v1092_v63 = vadd.f32 %v1560_v26, %v1091_v59  ;;  %v1120_v7 = vmax.f32 %v1100_v1, 0.0 }
 0x419   : > { %v1872_v62 = vpop.f32.mrf.mxu1 }
 0x41a   : > { %v1103_v0 = vadd.f32 %v1872_v62, %v1560_v26  ;;  %1897 = vmatprep.mubr.bf16.mxu1 %v1126_v60  ;;  %v1118_v5 = vmax.f32 %v1092_v63, 0.0 }
 0x41b   : > { %v1094_v2 = vpop.f32.mrf.mxu1  ;;  %1898 = vmatmul.mubr.bf16.vlgmr.msra.gmra.mxu1 %v1127_v61 }
 0x41c   : > { %v1095_v3 = vadd.f32 %v1560_v26, %v1094_v2  ;;  %v1121_v4 = vmax.f32 %v1103_v0, 0.0 }
 0x41e   : > { %v1119_v6 = vmax.f32 %v1095_v3, 0.0  ;;  %v1129_v9 = vpack.c.bf16 %v1121_v4, %v1120_v7 }
 0x420   : > { %v1128_v8 = vpack.c.bf16 %v1119_v6, %v1118_v5 }
 0x422   : > { %1901 = vmatprep.mubr.bf16.mxu1 %v1128_v8 }
 0x423   : > { %1902 = vmatmul.mubr.bf16.gmra.mxu1 %v1129_v9 }
 0x4cb   : > { %v1891_v10 = vpop.f32.mrf.mxu0 }
 0x4cc   : > { %v1244_v16 = vadd.f32 %v1891_v10, %v1569_v11 }
 0x4cd   : > { %v1235_v12 = vpop.f32.mrf.mxu0 }
 0x4ce   : > { %v1236_v24 = vadd.f32 %v1569_v11, %v1235_v12 }
 0x4cf   : > { %v1892_v13 = vpop.f32.mrf.mxu0 }
 0x4d0   : > { %v1247_v22 = vadd.f32 %v1892_v13, %v1569_v11 }
 0x4d1   : > { %v1238_v23 = vpop.f32.mrf.mxu0 }
 0x4d2   : > { %v1626_v25 = vpack.c.bf16 %v1247_v22, %v1244_v16  ;;  %v1239_v26 = vadd.f32 %v1569_v11, %v1238_v23 }
 0x4d3   : > { %v1895_v27 = vpop.f32.mrf.mxu0 }
 0x4d4   : > { %1658 = vst [vmem:[%s2587_s4 + $0x8] sm:$0xff] %v1626_v25   ;;  %v1621_v28 = vpack.c.bf16 %v1239_v26, %v1236_v24  ;;  %v1260_v31 = vadd.f32 %v1895_v27, %v1569_v11 }
 0x4d5   : > { %v1251_v29 = vpop.f32.mrf.mxu0 }
 0x4d6   : > { %1622 = vst [vmem:[%s2587_s4] sm:$0xff] %v1621_v28   ;;  %v1252_v34 = vadd.f32 %v1569_v11, %v1251_v29 }
 0x4d7   : > { %v1896_v30 = vpop.f32.mrf.mxu0 }
 0x4d8   : > { %v1263_v32 = vadd.f32 %v1896_v30, %v1569_v11 }
 0x4d9   : > { %v1254_v33 = vpop.f32.mrf.mxu0 }
 0x4da   : > { %v1636_v35 = vpack.c.bf16 %v1263_v32, %v1260_v31  ;;  %v1255_v36 = vadd.f32 %v1569_v11, %v1254_v33 }
 0x4db   : > { %v1899_v37 = vpop.f32.mrf.mxu1 }
 0x4dc   : > { %1660 = vst [vmem:[%s2587_s4 + $0x18] sm:$0xff] %v1636_v35   ;;  %v1631_v38 = vpack.c.bf16 %v1255_v36, %v1252_v34  ;;  %v1276_v41 = vadd.f32 %v1899_v37, %v1569_v11 }
 0x4dd   : > { %v1267_v39 = vpop.f32.mrf.mxu1 }
 0x4de   : > { %1659 = vst [vmem:[%s2587_s4 + $0x10] sm:$0xff] %v1631_v38   ;;  %v1268_v44 = vadd.f32 %v1569_v11, %v1267_v39 }
 0x4df   : > { %v1900_v40 = vpop.f32.mrf.mxu1 }
 0x4e0   : > { %v1279_v42 = vadd.f32 %v1900_v40, %v1569_v11 }
 0x4e1   : > { %v1270_v43 = vpop.f32.mrf.mxu1 }
 0x4e2   : > { %v1646_v45 = vpack.c.bf16 %v1279_v42, %v1276_v41  ;;  %v1271_v46 = vadd.f32 %v1569_v11, %v1270_v43 }
 0x4e3   : > { %v1903_v47 = vpop.f32.mrf.mxu1 }
 0x4e4   : > { %1662 = vst [vmem:[%s2587_s4 + $0x28] sm:$0xff] %v1646_v45   ;;  %v1641_v48 = vpack.c.bf16 %v1271_v46, %v1268_v44  ;;  %v1292_v51 = vadd.f32 %v1903_v47, %v1569_v11 }
 0x4e5   : > { %v1283_v49 = vpop.f32.mrf.mxu1 }
 0x4e6   : > { %1661 = vst [vmem:[%s2587_s4 + $0x20] sm:$0xff] %v1641_v48   ;;  %v1284_v54 = vadd.f32 %v1569_v11, %v1283_v49 }
 0x4e7   : > { %v1904_v50 = vpop.f32.mrf.mxu1 }
 0x4e8   : > { %v1295_v52 = vadd.f32 %v1904_v50, %v1569_v11 }
 0x4e9   : > { %v1286_v53 = vpop.f32.mrf.mxu1 }
 0x4ea   : > { %v1656_v55 = vpack.c.bf16 %v1295_v52, %v1292_v51  ;;  %v1287_v56 = vadd.f32 %v1569_v11, %v1286_v53 }
 0x4ec   : > { %1664 = vst [vmem:[%s2587_s4 + $0x38] sm:$0xff] %v1656_v55   ;;  %v1651_v14 = vpack.c.bf16 %v1287_v56, %v1284_v54 }
 0x4ee   : > { %1663 = vst [vmem:[%s2587_s4 + $0x30] sm:$0xff] %v1651_v14  }
 0x4ef   : > { %2194 = shalt.err (!%p2191_p6)
}
 0x4f0   : > { %s2195_s13 = scalar_lea.hbm %s2602_s16, 1024  ;;  %s2199_s11 = scalar_lea.hbm %s2655_s8, 2048 }
 0x4f1   : > { %p2196_p7 = scmp.ne.s32.totalorder %s2602_s16, %s2195_s13  ;;  %p2200_p11 = scmp.lt.s32.totalorder %s2602_s16, %s2655_s8 }
 0x4f2   : > { %p2201_p3 = scmp.lt.s32.totalorder %s2199_s11, %s2195_s13 }
 0x4f3   : > { %p2197_p5 = pnand %p2196_p7, %p2690_p13 }
 0x4f4   : > { %p2202_p12 = por %p2201_p3, %p2200_p11 }
 0x4f5   : > { %p2198_p8 = pneg %p2197_p5 }
 0x4f7   : > { %p2203_p9 = pnand %p2202_p12, %p2198_p8 }
 0x4f9   : > { %2206 = shalt.err (!%p2203_p9)
}
 0x4fa   : > { %s2267_s10 = smov 64   ;;  %s2268_s19 = smov 4  }
 0x4fb   : > { %1937 = dma.vmem_to_hbm [thread:$0]  (%p2690_p13), %s2597_s23, 1024, %s2602_s16, %s1379_s15, %s2267_s10, %s2267_s10, %s2268_s19  }
 0x4fc PF: > { %s1407_s22 = sand.u32 1, %s2245_s27   ;;  %p2691_p0 = scmp.ne.s32.totalorder %s2672_s12, 0 }
 0x4fd   : > { %p2692_p2 = scmp.ge.s32.totalorder %s2257_s30, 2  ;;  %s1408_s4 = scalar_lea.sflag [#allocation4], %s1407_s22 }
 0x4ff   : > { %p1957_p10 = pnand %p2692_p2, %p2691_p0 }
 0x501   : > { %p1958_p1 = pneg %p1957_p10 }
 0x503   : > { %2240 = dma.done.wait (%p1958_p1), %s1408_s4, 1024  }
 0x504   : > { %2242 = vsyncadd (%p1958_p1), %s1408_s4, 4294966272  ;;  %s2693_s30 = sld [smem:[#allocation18_spill]]  ;;  %s2696_s27 = smov %s2249_s28 }
 0x505   : > { %s2694_s26 = sld [smem:[#allocation17_spill]] }
 0x506   : > { %s2695_s29 = sld [smem:[#allocation19_spill]] }
 0x50a   : > { %p25_p4 = scmp.ge.s32.totalorder %s2693_s30, 4  }
 0x50b   : > { %s2697_s28 = smov %s2694_s26 }
 0x50c   :  { %27 = sbr.rel (!%p25_p4) target bundleno = 13 (0xd), region = 122 }
 0x511   :  { %1413 = vsyncpa [#allocation3], 1 }
 0x512   :  { %1415 = vsyncpa [#allocation3 + $0x1], 1 }
 0x513   :  { %1416 = vsyncpa [#allocation6], 1 }
 0x514   :  { %1418 = vsyncpa [#allocation6 + $0x1], 1 }
 0x515   :  { %1419 = vsyncpa [#allocation9], 1 }
 0x516   :  { %1420 = vsyncpa [#allocation4], 1 }
 0x517   :  { %1422 = vsyncpa [#allocation4 + $0x1], 1 }

</bundles_post_ra>
